<compile_context>
chip_gen: v6e
topology: v6e:2x2x1
jax: 0.10.0
libtpu: 0.0.40
codegen_flags: <defaults>
</compile_context>

<pallas_src>
import math
import functools

import jax
import jax.numpy as jnp
from jax.experimental import pallas as pl
from jax.experimental.pallas import tpu as pltpu


def _mhsa_kernel(x_ref, wq_ref, bq_ref, wk_ref, bk_ref, wv_ref, bv_ref,
                 *out_and_scratch, h, dk, dv, T, tq, inv_sqrt_dk, with_scores):
    # x_ref   : (1, T, dmodel)
    # wq_ref  : (dmodel, h*dk)   bq_ref : (1, h*dk)
    # wk_ref  : (dmodel, h*dk)   bk_ref : (1, h*dk)
    # wv_ref  : (dmodel, h*dv)   bv_ref : (1, h*dv)
    # out_ref : (1, tq, dmodel)  scores_ref : (1, h, tq, T)   (optional)
    # q_scr   : (h, tq, dk)      k_scr : (h, T, dk)   v_scr : (h, T, dv)
    if with_scores:
        out_ref, scores_ref, q_scr, k_scr, v_scr = out_and_scratch
    else:
        out_ref, q_scr, k_scr, v_scr = out_and_scratch
        scores_ref = None

    qi = pl.program_id(1)

    # ---- K / V projections: once per batch element, carried across q tiles ----
    @pl.when(qi == 0)
    def _():
        xb = x_ref[0]                                                # (T, dmodel)
        k = jnp.dot(xb, wk_ref[...],
                    preferred_element_type=jnp.float32) + bk_ref[...]   # (T, h*dk)
        v = jnp.dot(xb, wv_ref[...],
                    preferred_element_type=jnp.float32) + bv_ref[...]   # (T, h*dv)
        # Head-split layout transform done ONCE per batch element (static loop,
        # lane slices -> leading-index scratch stores); downstream matmuls are
        # batched over the head dim.
        for hh in range(h):
            k_scr[hh] = k[:, hh * dk:(hh + 1) * dk].astype(k_scr.dtype)
            v_scr[hh] = v[:, hh * dv:(hh + 1) * dv].astype(v_scr.dtype)

    # ---- Q projection for this query tile (full-width MXU matmul) ----
    if tq == T:
        xq = x_ref[0]                                                # (tq, dmodel)
    else:
        q_start = pl.multiple_of(qi * tq, tq)
        xq = x_ref[0, pl.ds(q_start, tq), :]                         # (tq, dmodel)
    q = jnp.dot(xq, wq_ref[...],
                preferred_element_type=jnp.float32) + bq_ref[...]    # (tq, h*dk)
    q = q * inv_sqrt_dk       # scale q once (tq*h*dk mults), not the T*T scores
    for hh in range(h):
        q_scr[hh] = q[:, hh * dk:(hh + 1) * dk].astype(q_scr.dtype)

    # ---- Attention, batched over heads (leading batch dim h) ----
    qh = q_scr[...]                                                  # (h, tq, dk)
    kh = k_scr[...]                                                  # (h, T,  dk)
    vh = v_scr[...]                                                  # (h, T,  dv)

    s = jnp.einsum('hqd,hkd->hqk', qh, kh,
                   preferred_element_type=jnp.float32)               # (h, tq, T)
    if with_scores:
        scores_ref[0] = s.astype(scores_ref.dtype)

    # TODO(synk): optional attention_mask (masked_fill with -inf) not plumbed;
    # this matches the attention_mask=None path of the PyTorch module.

    # Numerically stable softmax over keys (f32; reductions on XLU, exp on EUP).
    m = jnp.max(s, axis=-1, keepdims=True)
    e = jnp.exp(s - m)
    denom = jnp.sum(e, axis=-1, keepdims=True)
    # Exact reciprocal keeps the 1e-5 reference tolerance; flip to approx=True
    # (EUP vrcp, ~free slot) when that precision isn't required.
    p = e * pl.reciprocal(denom, approx=False)                       # (h, tq, T)

    o = jnp.einsum('hqk,hkd->hqd', p.astype(vh.dtype), vh,
                   preferred_element_type=jnp.float32)               # (h, tq, dv)

    # Store each head straight into its lane range of the (tq, dmodel) output
    # block -- no concatenate, no intermediate copies.
    for hh in range(h):
        out_ref[0, :, hh * dv:(hh + 1) * dv] = o[hh].astype(out_ref.dtype)


def _choose_q_tile(T):
    # Query-tile size: multiples of 128 keep lane-dense stores / MXU-friendly
    # tiles at large T; tiny or irregular T runs as a single tile.
    # TODO(synk): halve the tile for v7x (64 MiB VMEM) at very large T/dmodel.
    for cand in (256, 128):
        if T % cand == 0:
            return cand
    return T


def _vmem_limit_bytes(T, dmodel, h, dk, dv, tq, compute_dtype, with_scores):
    cb = jnp.dtype(compute_dtype).itemsize
    x_blk = T * dmodel * cb
    w_blk = 2 * dmodel * h * dk * cb + dmodel * h * dv * cb
    b_blk = (2 * h * dk + h * dv) * 4
    out_blk = tq * dmodel * 4
    sc_blk = h * tq * T * 4 if with_scores else 0
    scratch = (h * T * dk + h * T * dv + h * tq * dk) * cb
    need = 2 * (x_blk + w_blk + b_blk + out_blk + sc_blk) + scratch  # x2: dbl buffering
    # Sized from the actual footprint with 2x headroom; capped at v7x physical.
    return int(min(64 * 2 ** 20, max(32 * 2 ** 20, 2 * need)))


def multi_head_self_attention(x, params, *, h, dk, compute_dtype=jnp.float32,
                              return_scores=True):
    """x: [B, T, dmodel] float32. Returns (output [B, T, dmodel], scores [B,h,T,T])."""
    B, T, dmodel = x.shape
    assert dmodel % h == 0, "dmodel must be divisible by h"
    dv = dmodel // h                    # h * dv == dmodel (out layout relies on it)

    tq = _choose_q_tile(T)
    assert T % tq == 0
    n_q = T // tq

    # Weights stay in their fused [dmodel, h*dk] / [dmodel, dmodel] layout and are
    # pre-cast to the compute dtype in the wrapper (bf16 path: halves weight DMA
    # and removes in-kernel cast VPU work).  Biases stay f32 (added onto the f32
    # MXU accumulators).  Default compute dtype is f32 for the 1e-5 check.
    # TODO(synk): K-tile the projection weights (reduction grid axis) for dmodel
    # large enough that a full W block no longer fits VMEM.
    cast = lambda a: a.astype(compute_dtype)
    x_c = cast(x)
    Wq, Wk, Wv = cast(params["Wq"]), cast(params["Wk"]), cast(params["Wv"])
    bq = params["bq"].reshape(1, h * dk).astype(jnp.float32)
    bk = params["bk"].reshape(1, h * dk).astype(jnp.float32)
    bv = params["bv"].reshape(1, h * dv).astype(jnp.float32)

    kernel = functools.partial(
        _mhsa_kernel, h=h, dk=dk, dv=dv, T=T, tq=tq,
        inv_sqrt_dk=1.0 / math.sqrt(dk), with_scores=return_scores)

    out_shape = [jax.ShapeDtypeStruct((B, T, dmodel), jnp.float32)]
    out_specs = [pl.BlockSpec((1, tq, dmodel), lambda b, qi: (b, qi, 0))]
    if return_scores:
        out_shape.append(jax.ShapeDtypeStruct((B, h, T, T), jnp.float32))
        out_specs.append(pl.BlockSpec((1, h, tq, T), lambda b, qi: (b, 0, qi, 0)))

    grid_spec = pltpu.PrefetchScalarGridSpec(
        num_scalar_prefetch=0,
        grid=(B, n_q),
        in_specs=[
            pl.BlockSpec((1, T, dmodel), lambda b, qi: (b, 0, 0)),     # x (full seq)
            pl.BlockSpec((dmodel, h * dk), lambda b, qi: (0, 0)),      # Wq
            pl.BlockSpec((1, h * dk), lambda b, qi: (0, 0)),           # bq
            pl.BlockSpec((dmodel, h * dk), lambda b, qi: (0, 0)),      # Wk
            pl.BlockSpec((1, h * dk), lambda b, qi: (0, 0)),           # bk
            pl.BlockSpec((dmodel, h * dv), lambda b, qi: (0, 0)),      # Wv
            pl.BlockSpec((1, h * dv), lambda b, qi: (0, 0)),           # bv
        ],
        out_specs=tuple(out_specs),
        scratch_shapes=[
            pltpu.VMEM((h, tq, dk), compute_dtype),   # q, head-batched
            pltpu.VMEM((h, T, dk), compute_dtype),    # k, carried across q tiles
            pltpu.VMEM((h, T, dv), compute_dtype),    # v, carried across q tiles
        ],
    )

    results = pl.pallas_call(
        kernel,
        out_shape=tuple(out_shape),
        grid_spec=grid_spec,
        compiler_params=pltpu.CompilerParams(
            # B axis parallel (megacore / 2 TCs on v7x); q-tile axis 'arbitrary'
            # because the K/V scratch carry crosses it within a batch element.
            dimension_semantics=("parallel", "arbitrary"),
            vmem_limit_bytes=_vmem_limit_bytes(
                T, dmodel, h, dk, dv, tq, compute_dtype, return_scores),
        ),
    )(x_c, Wq, bq, Wk, bk, Wv, bv)

    if return_scores:
        out, scores = results
        return out, scores
    return results[0], None


def init_params(key, dmodel, dk, h):
    """Deterministic init matching nn.Linear shapes (stored as (in, out) for x @ W + b)."""
    ks = jax.random.split(key, 6)
    bound = 1.0 / math.sqrt(dmodel)
    return {
        "Wq": jax.random.uniform(ks[0], (dmodel, dk * h), jnp.float32, -bound, bound),
        "bq": jax.random.uniform(ks[1], (dk * h,), jnp.float32, -bound, bound),
        "Wk": jax.random.uniform(ks[2], (dmodel, dk * h), jnp.float32, -bound, bound),
        "bk": jax.random.uniform(ks[3], (dk * h,), jnp.float32, -bound, bound),
        "Wv": jax.random.uniform(ks[4], (dmodel, dmodel), jnp.float32, -bound, bound),
        "bv": jax.random.uniform(ks[5], (dmodel,), jnp.float32, -bound, bound),
    }


def _reference(x, params, *, h, dk):
    """Pure-JAX reference reproducing the PyTorch forward (attention_mask=None)."""
    B, T, dmodel = x.shape
    dv = dmodel // h
    q = (x @ params["Wq"] + params["bq"]).reshape(B, T, h, dk).transpose(0, 2, 1, 3)
    k = (x @ params["Wk"] + params["bk"]).reshape(B, T, h, dk).transpose(0, 2, 1, 3)
    v = (x @ params["Wv"] + params["bv"]).reshape(B, T, h, dv).transpose(0, 2, 1, 3)
    scores = jnp.einsum("bhqd,bhkd->bhqk", q, k) / math.sqrt(dk)
    probs = jax.nn.softmax(scores, axis=-1)
    out = jnp.einsum("bhqk,bhkd->bhqd", probs, v)
    out = out.transpose(0, 2, 1, 3).reshape(B, T, dmodel)
    return out, scores


if __name__ == "__main__":
    B, T, dmodel, dk, h = 2, 8, 32, 8, 4

    key = jax.random.PRNGKey(0)
    k_x, k_p = jax.random.split(key)
    x = jax.random.normal(k_x, (B, T, dmodel), dtype=jnp.float32)
    params = init_params(k_p, dmodel, dk, h)

    out, scores = multi_head_self_attention(x, params, h=h, dk=dk)
    out = jax.block_until_ready(out)
    scores = jax.block_until_ready(scores)

    ref_out, ref_scores = _reference(x, params, h=h, dk=dk)
    assert out.shape == (B, T, dmodel) and scores.shape == (B, h, T, T)
    assert jnp.allclose(out, ref_out, atol=1e-5, rtol=1e-5)
    assert jnp.allclose(scores, ref_scores, atol=1e-5, rtol=1e-5)

    print("KERNEL_OK")
</pallas_src>

<mosaic_0001>
module attributes {stable_mosaic.version = 11 : i64} {
  func.func @_mhsa_kernel(%arg0: i32, %arg1: i32, %arg2: memref<1x8x32xf32, #tpu.memory_space<vmem>>, %arg3: memref<32x32xf32, #tpu.memory_space<vmem>>, %arg4: memref<1x32xf32, #tpu.memory_space<vmem>>, %arg5: memref<32x32xf32, #tpu.memory_space<vmem>>, %arg6: memref<1x32xf32, #tpu.memory_space<vmem>>, %arg7: memref<32x32xf32, #tpu.memory_space<vmem>>, %arg8: memref<1x32xf32, #tpu.memory_space<vmem>>, %arg9: memref<1x8x32xf32, #tpu.memory_space<vmem>>, %arg10: memref<1x4x8x8xf32, #tpu.memory_space<vmem>>, %arg11: memref<4x8x8xf32, #tpu.memory_space<vmem>>, %arg12: memref<4x8x8xf32, #tpu.memory_space<vmem>>, %arg13: memref<4x8x8xf32, #tpu.memory_space<vmem>>) attributes {dimension_semantics = [#tpu.dimension_semantics<parallel>, #tpu.dimension_semantics<arbitrary>], iteration_bounds = array<i64: 2, 1>, scalar_prefetch = 0 : i64, scratch_operands = 3 : i64, tpu.core_type = #tpu.core_type<tc>, window_params = [{transform_indices = @transform_0, window_bounds = array<i64: 1, 8, 32>}, {pipeline_mode = #tpu.pipeline_mode<synchronous>, transform_indices = @transform_1, window_bounds = array<i64: 32, 32>}, {pipeline_mode = #tpu.pipeline_mode<synchronous>, transform_indices = @transform_2, window_bounds = array<i64: 1, 32>}, {pipeline_mode = #tpu.pipeline_mode<synchronous>, transform_indices = @transform_3, window_bounds = array<i64: 32, 32>}, {pipeline_mode = #tpu.pipeline_mode<synchronous>, transform_indices = @transform_4, window_bounds = array<i64: 1, 32>}, {pipeline_mode = #tpu.pipeline_mode<synchronous>, transform_indices = @transform_5, window_bounds = array<i64: 32, 32>}, {pipeline_mode = #tpu.pipeline_mode<synchronous>, transform_indices = @transform_6, window_bounds = array<i64: 1, 32>}, {transform_indices = @transform_7, window_bounds = array<i64: 1, 8, 32>}, {transform_indices = @transform_8, window_bounds = array<i64: 1, 4, 8, 8>}]} {
    %c0_i32 = arith.constant 0 : i32
    %0 = arith.cmpi eq, %arg1, %c0_i32 : i32
    %1 = arith.extui %0 : i1 to i32
    %c0_i32_0 = arith.constant 0 : i32
    %2 = arith.cmpi ne, %1, %c0_i32_0 : i32
    scf.if %2 {
      %c0_43 = arith.constant 0 : index
      %c0_44 = arith.constant 0 : index
      %c0_45 = arith.constant 0 : index
      %66 = vector.load %arg2[%c0_43, %c0_44, %c0_45] : memref<1x8x32xf32, #tpu.memory_space<vmem>>, vector<1x8x32xf32>
      %67 = vector.shape_cast %66 : vector<1x8x32xf32> to vector<8x32xf32>
      %c0_46 = arith.constant 0 : index
      %c0_47 = arith.constant 0 : index
      %68 = vector.load %arg5[%c0_46, %c0_47] : memref<32x32xf32, #tpu.memory_space<vmem>>, vector<32x32xf32>
      %cst_48 = arith.constant dense<0.000000e+00> : vector<8x32xf32>
      %69 = tpu.matmul %67, %68, %cst_48 {dimension_numbers = #tpu.dot_dimension_numbers<[1], [0], [0], [1], [0, 0, 1, 1], [], []>} : vector<8x32xf32>, vector<32x32xf32>, vector<8x32xf32> -> vector<8x32xf32>
      %c0_49 = arith.constant 0 : index
      %c0_50 = arith.constant 0 : index
      %70 = vector.load %arg6[%c0_49, %c0_50] : memref<1x32xf32, #tpu.memory_space<vmem>>, vector<1x32xf32>
      %71 = vector.broadcast %70 : vector<1x32xf32> to vector<8x32xf32>
      %72 = arith.addf %69, %71 : vector<8x32xf32>
      %c0_51 = arith.constant 0 : index
      %c0_52 = arith.constant 0 : index
      %73 = vector.load %arg7[%c0_51, %c0_52] : memref<32x32xf32, #tpu.memory_space<vmem>>, vector<32x32xf32>
      %cst_53 = arith.constant dense<0.000000e+00> : vector<8x32xf32>
      %74 = tpu.matmul %67, %73, %cst_53 {dimension_numbers = #tpu.dot_dimension_numbers<[1], [0], [0], [1], [0, 0, 1, 1], [], []>} : vector<8x32xf32>, vector<32x32xf32>, vector<8x32xf32> -> vector<8x32xf32>
      %c0_54 = arith.constant 0 : index
      %c0_55 = arith.constant 0 : index
      %75 = vector.load %arg8[%c0_54, %c0_55] : memref<1x32xf32, #tpu.memory_space<vmem>>, vector<1x32xf32>
      %76 = vector.broadcast %75 : vector<1x32xf32> to vector<8x32xf32>
      %77 = arith.addf %74, %76 : vector<8x32xf32>
      %78 = vector.extract_strided_slice %72 {offsets = [0, 0], sizes = [8, 8], strides = [1, 1]} : vector<8x32xf32> to vector<8x8xf32>
      %c0_56 = arith.constant 0 : index
      %c0_57 = arith.constant 0 : index
      %c0_58 = arith.constant 0 : index
      %79 = vector.load %arg12[%c0_56, %c0_57, %c0_58] : memref<4x8x8xf32, #tpu.memory_space<vmem>>, vector<1x8x8xf32>
      %80 = vector.shape_cast %79 : vector<1x8x8xf32> to vector<8x8xf32>
      %81 = vector.shape_cast %78 : vector<8x8xf32> to vector<1x8x8xf32>
      tpu.vector_store %arg12[%c0_56, %c0_57, %c0_58], %81 {strides = array<i32>} : memref<4x8x8xf32, #tpu.memory_space<vmem>>, vector<1x8x8xf32>,
      %82 = vector.extract_strided_slice %77 {offsets = [0, 0], sizes = [8, 8], strides = [1, 1]} : vector<8x32xf32> to vector<8x8xf32>
      %c0_59 = arith.constant 0 : index
      %c0_60 = arith.constant 0 : index
      %c0_61 = arith.constant 0 : index
      %83 = vector.load %arg13[%c0_59, %c0_60, %c0_61] : memref<4x8x8xf32, #tpu.memory_space<vmem>>, vector<1x8x8xf32>
      %84 = vector.shape_cast %83 : vector<1x8x8xf32> to vector<8x8xf32>
      %85 = vector.shape_cast %82 : vector<8x8xf32> to vector<1x8x8xf32>
      tpu.vector_store %arg13[%c0_59, %c0_60, %c0_61], %85 {strides = array<i32>} : memref<4x8x8xf32, #tpu.memory_space<vmem>>, vector<1x8x8xf32>,
      %86 = vector.extract_strided_slice %72 {offsets = [0, 8], sizes = [8, 8], strides = [1, 1]} : vector<8x32xf32> to vector<8x8xf32>
      %c1_62 = arith.constant 1 : index
      %c0_63 = arith.constant 0 : index
      %c0_64 = arith.constant 0 : index
      %87 = vector.load %arg12[%c1_62, %c0_63, %c0_64] : memref<4x8x8xf32, #tpu.memory_space<vmem>>, vector<1x8x8xf32>
      %88 = vector.shape_cast %87 : vector<1x8x8xf32> to vector<8x8xf32>
      %89 = vector.shape_cast %86 : vector<8x8xf32> to vector<1x8x8xf32>
      tpu.vector_store %arg12[%c1_62, %c0_63, %c0_64], %89 {strides = array<i32>} : memref<4x8x8xf32, #tpu.memory_space<vmem>>, vector<1x8x8xf32>,
      %90 = vector.extract_strided_slice %77 {offsets = [0, 8], sizes = [8, 8], strides = [1, 1]} : vector<8x32xf32> to vector<8x8xf32>
      %c1_65 = arith.constant 1 : index
      %c0_66 = arith.constant 0 : index
      %c0_67 = arith.constant 0 : index
      %91 = vector.load %arg13[%c1_65, %c0_66, %c0_67] : memref<4x8x8xf32, #tpu.memory_space<vmem>>, vector<1x8x8xf32>
      %92 = vector.shape_cast %91 : vector<1x8x8xf32> to vector<8x8xf32>
      %93 = vector.shape_cast %90 : vector<8x8xf32> to vector<1x8x8xf32>
      tpu.vector_store %arg13[%c1_65, %c0_66, %c0_67], %93 {strides = array<i32>} : memref<4x8x8xf32, #tpu.memory_space<vmem>>, vector<1x8x8xf32>,
      %94 = vector.extract_strided_slice %72 {offsets = [0, 16], sizes = [8, 8], strides = [1, 1]} : vector<8x32xf32> to vector<8x8xf32>
      %c2_68 = arith.constant 2 : index
      %c0_69 = arith.constant 0 : index
      %c0_70 = arith.constant 0 : index
      %95 = vector.load %arg12[%c2_68, %c0_69, %c0_70] : memref<4x8x8xf32, #tpu.memory_space<vmem>>, vector<1x8x8xf32>
      %96 = vector.shape_cast %95 : vector<1x8x8xf32> to vector<8x8xf32>
      %97 = vector.shape_cast %94 : vector<8x8xf32> to vector<1x8x8xf32>
      tpu.vector_store %arg12[%c2_68, %c0_69, %c0_70], %97 {strides = array<i32>} : memref<4x8x8xf32, #tpu.memory_space<vmem>>, vector<1x8x8xf32>,
      %98 = vector.extract_strided_slice %77 {offsets = [0, 16], sizes = [8, 8], strides = [1, 1]} : vector<8x32xf32> to vector<8x8xf32>
      %c2_71 = arith.constant 2 : index
      %c0_72 = arith.constant 0 : index
      %c0_73 = arith.constant 0 : index
      %99 = vector.load %arg13[%c2_71, %c0_72, %c0_73] : memref<4x8x8xf32, #tpu.memory_space<vmem>>, vector<1x8x8xf32>
      %100 = vector.shape_cast %99 : vector<1x8x8xf32> to vector<8x8xf32>
      %101 = vector.shape_cast %98 : vector<8x8xf32> to vector<1x8x8xf32>
      tpu.vector_store %arg13[%c2_71, %c0_72, %c0_73], %101 {strides = array<i32>} : memref<4x8x8xf32, #tpu.memory_space<vmem>>, vector<1x8x8xf32>,
      %102 = vector.extract_strided_slice %72 {offsets = [0, 24], sizes = [8, 8], strides = [1, 1]} : vector<8x32xf32> to vector<8x8xf32>
      %c3_74 = arith.constant 3 : index
      %c0_75 = arith.constant 0 : index
      %c0_76 = arith.constant 0 : index
      %103 = vector.load %arg12[%c3_74, %c0_75, %c0_76] : memref<4x8x8xf32, #tpu.memory_space<vmem>>, vector<1x8x8xf32>
      %104 = vector.shape_cast %103 : vector<1x8x8xf32> to vector<8x8xf32>
      %105 = vector.shape_cast %102 : vector<8x8xf32> to vector<1x8x8xf32>
      tpu.vector_store %arg12[%c3_74, %c0_75, %c0_76], %105 {strides = array<i32>} : memref<4x8x8xf32, #tpu.memory_space<vmem>>, vector<1x8x8xf32>,
      %106 = vector.extract_strided_slice %77 {offsets = [0, 24], sizes = [8, 8], strides = [1, 1]} : vector<8x32xf32> to vector<8x8xf32>
      %c3_77 = arith.constant 3 : index
      %c0_78 = arith.constant 0 : index
      %c0_79 = arith.constant 0 : index
      %107 = vector.load %arg13[%c3_77, %c0_78, %c0_79] : memref<4x8x8xf32, #tpu.memory_space<vmem>>, vector<1x8x8xf32>
      %108 = vector.shape_cast %107 : vector<1x8x8xf32> to vector<8x8xf32>
      %109 = vector.shape_cast %106 : vector<8x8xf32> to vector<1x8x8xf32>
      tpu.vector_store %arg13[%c3_77, %c0_78, %c0_79], %109 {strides = array<i32>} : memref<4x8x8xf32, #tpu.memory_space<vmem>>, vector<1x8x8xf32>,
    } else {
    }
    %c0 = arith.constant 0 : index
    %c0_1 = arith.constant 0 : index
    %c0_2 = arith.constant 0 : index
    %3 = vector.load %arg2[%c0, %c0_1, %c0_2] : memref<1x8x32xf32, #tpu.memory_space<vmem>>, vector<1x8x32xf32>
    %4 = vector.shape_cast %3 : vector<1x8x32xf32> to vector<8x32xf32>
    %c0_3 = arith.constant 0 : index
    %c0_4 = arith.constant 0 : index
    %5 = vector.load %arg3[%c0_3, %c0_4] : memref<32x32xf32, #tpu.memory_space<vmem>>, vector<32x32xf32>
    %cst = arith.constant dense<0.000000e+00> : vector<8x32xf32>
    %6 = tpu.matmul %4, %5, %cst {dimension_numbers = #tpu.dot_dimension_numbers<[1], [0], [0], [1], [0, 0, 1, 1], [], []>} : vector<8x32xf32>, vector<32x32xf32>, vector<8x32xf32> -> vector<8x32xf32>
    %c0_5 = arith.constant 0 : index
    %c0_6 = arith.constant 0 : index
    %7 = vector.load %arg4[%c0_5, %c0_6] : memref<1x32xf32, #tpu.memory_space<vmem>>, vector<1x32xf32>
    %8 = vector.broadcast %7 : vector<1x32xf32> to vector<8x32xf32>
    %9 = arith.addf %6, %8 : vector<8x32xf32>
    %cst_7 = arith.constant 0.353553385 : f32
    %10 = vector.broadcast %cst_7 : f32 to vector<8x32xf32>
    %11 = arith.mulf %9, %10 : vector<8x32xf32>
    %12 = vector.extract_strided_slice %11 {offsets = [0, 0], sizes = [8, 8], strides = [1, 1]} : vector<8x32xf32> to vector<8x8xf32>
    %c0_8 = arith.constant 0 : index
    %c0_9 = arith.constant 0 : index
    %c0_10 = arith.constant 0 : index
    %13 = vector.load %arg11[%c0_8, %c0_9, %c0_10] : memref<4x8x8xf32, #tpu.memory_space<vmem>>, vector<1x8x8xf32>
    %14 = vector.shape_cast %13 : vector<1x8x8xf32> to vector<8x8xf32>
    %15 = vector.shape_cast %12 : vector<8x8xf32> to vector<1x8x8xf32>
    tpu.vector_store %arg11[%c0_8, %c0_9, %c0_10], %15 {strides = array<i32>} : memref<4x8x8xf32, #tpu.memory_space<vmem>>, vector<1x8x8xf32>,
    %16 = vector.extract_strided_slice %11 {offsets = [0, 8], sizes = [8, 8], strides = [1, 1]} : vector<8x32xf32> to vector<8x8xf32>
    %c1 = arith.constant 1 : index
    %c0_11 = arith.constant 0 : index
    %c0_12 = arith.constant 0 : index
    %17 = vector.load %arg11[%c1, %c0_11, %c0_12] : memref<4x8x8xf32, #tpu.memory_space<vmem>>, vector<1x8x8xf32>
    %18 = vector.shape_cast %17 : vector<1x8x8xf32> to vector<8x8xf32>
    %19 = vector.shape_cast %16 : vector<8x8xf32> to vector<1x8x8xf32>
    tpu.vector_store %arg11[%c1, %c0_11, %c0_12], %19 {strides = array<i32>} : memref<4x8x8xf32, #tpu.memory_space<vmem>>, vector<1x8x8xf32>,
    %20 = vector.extract_strided_slice %11 {offsets = [0, 16], sizes = [8, 8], strides = [1, 1]} : vector<8x32xf32> to vector<8x8xf32>
    %c2 = arith.constant 2 : index
    %c0_13 = arith.constant 0 : index
    %c0_14 = arith.constant 0 : index
    %21 = vector.load %arg11[%c2, %c0_13, %c0_14] : memref<4x8x8xf32, #tpu.memory_space<vmem>>, vector<1x8x8xf32>
    %22 = vector.shape_cast %21 : vector<1x8x8xf32> to vector<8x8xf32>
    %23 = vector.shape_cast %20 : vector<8x8xf32> to vector<1x8x8xf32>
    tpu.vector_store %arg11[%c2, %c0_13, %c0_14], %23 {strides = array<i32>} : memref<4x8x8xf32, #tpu.memory_space<vmem>>, vector<1x8x8xf32>,
    %24 = vector.extract_strided_slice %11 {offsets = [0, 24], sizes = [8, 8], strides = [1, 1]} : vector<8x32xf32> to vector<8x8xf32>
    %c3 = arith.constant 3 : index
    %c0_15 = arith.constant 0 : index
    %c0_16 = arith.constant 0 : index
    %25 = vector.load %arg11[%c3, %c0_15, %c0_16] : memref<4x8x8xf32, #tpu.memory_space<vmem>>, vector<1x8x8xf32>
    %26 = vector.shape_cast %25 : vector<1x8x8xf32> to vector<8x8xf32>
    %27 = vector.shape_cast %24 : vector<8x8xf32> to vector<1x8x8xf32>
    tpu.vector_store %arg11[%c3, %c0_15, %c0_16], %27 {strides = array<i32>} : memref<4x8x8xf32, #tpu.memory_space<vmem>>, vector<1x8x8xf32>,
    %c0_17 = arith.constant 0 : index
    %c0_18 = arith.constant 0 : index
    %c0_19 = arith.constant 0 : index
    %28 = vector.load %arg11[%c0_17, %c0_18, %c0_19] : memref<4x8x8xf32, #tpu.memory_space<vmem>>, vector<4x8x8xf32>
    %c0_20 = arith.constant 0 : index
    %c0_21 = arith.constant 0 : index
    %c0_22 = arith.constant 0 : index
    %29 = vector.load %arg12[%c0_20, %c0_21, %c0_22] : memref<4x8x8xf32, #tpu.memory_space<vmem>>, vector<4x8x8xf32>
    %c0_23 = arith.constant 0 : index
    %c0_24 = arith.constant 0 : index
    %c0_25 = arith.constant 0 : index
    %30 = vector.load %arg13[%c0_23, %c0_24, %c0_25] : memref<4x8x8xf32, #tpu.memory_space<vmem>>, vector<4x8x8xf32>
    "tpu.trace_start"() <{level = 10 : i32, message = "hqd,hkd->hqk"}> : () -> ()
    %cst_26 = arith.constant dense<0.000000e+00> : vector<4x8x8xf32>
    %31 = tpu.matmul %28, %29, %cst_26 {dimension_numbers = #tpu.dot_dimension_numbers<[2], [2], [1], [1], [0, 0, 0, 1, 1, 1], [0], [0]>} : vector<4x8x8xf32>, vector<4x8x8xf32>, vector<4x8x8xf32> -> vector<4x8x8xf32>
    "tpu.trace_stop"() : () -> ()
    %c0_27 = arith.constant 0 : index
    %c0_28 = arith.constant 0 : index
    %c0_29 = arith.constant 0 : index
    %c0_30 = arith.constant 0 : index
    %32 = vector.load %arg10[%c0_27, %c0_28, %c0_29, %c0_30] : memref<1x4x8x8xf32, #tpu.memory_space<vmem>>, vector<1x4x8x8xf32>
    %33 = vector.shape_cast %32 : vector<1x4x8x8xf32> to vector<4x8x8xf32>
    %34 = vector.shape_cast %31 : vector<4x8x8xf32> to vector<1x4x8x8xf32>
    tpu.vector_store %arg10[%c0_27, %c0_28, %c0_29, %c0_30], %34 {strides = array<i32>} : memref<1x4x8x8xf32, #tpu.memory_space<vmem>>, vector<1x4x8x8xf32>,
    %cst_31 = arith.constant dense<0xFF800000> : vector<4x8xf32>
    %35 = vector.multi_reduction <maximumf>, %31, %cst_31 [2] : vector<4x8x8xf32> to vector<4x8xf32>
    %36 = vector.shape_cast %35 : vector<4x8xf32> to vector<4x8x1xf32>
    %37 = vector.broadcast %36 : vector<4x8x1xf32> to vector<4x8x8xf32>
    %38 = arith.subf %31, %37 : vector<4x8x8xf32>
    %39 = math.exp %38 : vector<4x8x8xf32>
    %cst_32 = arith.constant dense<0.000000e+00> : vector<4x8xf32>
    %40 = vector.multi_reduction <add>, %39, %cst_32 [2] : vector<4x8x8xf32> to vector<4x8xf32>
    %41 = vector.shape_cast %40 : vector<4x8xf32> to vector<4x8x1xf32>
    %42 = tpu.reciprocal %41 : vector<4x8x1xf32> -> vector<4x8x1xf32>
    %43 = vector.broadcast %42 : vector<4x8x1xf32> to vector<4x8x8xf32>
    %44 = arith.mulf %39, %43 : vector<4x8x8xf32>
    "tpu.trace_start"() <{level = 10 : i32, message = "hqk,hkd->hqd"}> : () -> ()
    %cst_33 = arith.constant dense<0.000000e+00> : vector<4x8x8xf32>
    %45 = tpu.matmul %44, %30, %cst_33 {dimension_numbers = #tpu.dot_dimension_numbers<[2], [1], [1], [2], [0, 0, 0, 1, 1, 2], [0], [0]>} : vector<4x8x8xf32>, vector<4x8x8xf32>, vector<4x8x8xf32> -> vector<4x8x8xf32>
    "tpu.trace_stop"() : () -> ()
    %46 = vector.extract_strided_slice %45 {offsets = [0, 0, 0], sizes = [1, 8, 8], strides = [1, 1, 1]} : vector<4x8x8xf32> to vector<1x8x8xf32>
    %47 = vector.shape_cast %46 : vector<1x8x8xf32> to vector<8x8xf32>
    %c0_34 = arith.constant 0 : index
    %c0_35 = arith.constant 0 : index
    %c0_36 = arith.constant 0 : index
    %48 = vector.load %arg9[%c0_34, %c0_35, %c0_36] : memref<1x8x32xf32, #tpu.memory_space<vmem>>, vector<1x8x8xf32>
    %49 = vector.shape_cast %48 : vector<1x8x8xf32> to vector<8x8xf32>
    %50 = vector.shape_cast %47 : vector<8x8xf32> to vector<1x8x8xf32>
    tpu.vector_store %arg9[%c0_34, %c0_35, %c0_36], %50 {strides = array<i32>} : memref<1x8x32xf32, #tpu.memory_space<vmem>>, vector<1x8x8xf32>,
    %51 = vector.extract_strided_slice %45 {offsets = [1, 0, 0], sizes = [1, 8, 8], strides = [1, 1, 1]} : vector<4x8x8xf32> to vector<1x8x8xf32>
    %52 = vector.shape_cast %51 : vector<1x8x8xf32> to vector<8x8xf32>
    %c0_37 = arith.constant 0 : index
    %c0_38 = arith.constant 0 : index
    %c8 = arith.constant 8 : index
    %53 = vector.load %arg9[%c0_37, %c0_38, %c8] : memref<1x8x32xf32, #tpu.memory_space<vmem>>, vector<1x8x8xf32>
    %54 = vector.shape_cast %53 : vector<1x8x8xf32> to vector<8x8xf32>
    %55 = vector.shape_cast %52 : vector<8x8xf32> to vector<1x8x8xf32>
    tpu.vector_store %arg9[%c0_37, %c0_38, %c8], %55 {strides = array<i32>} : memref<1x8x32xf32, #tpu.memory_space<vmem>>, vector<1x8x8xf32>,
    %56 = vector.extract_strided_slice %45 {offsets = [2, 0, 0], sizes = [1, 8, 8], strides = [1, 1, 1]} : vector<4x8x8xf32> to vector<1x8x8xf32>
    %57 = vector.shape_cast %56 : vector<1x8x8xf32> to vector<8x8xf32>
    %c0_39 = arith.constant 0 : index
    %c0_40 = arith.constant 0 : index
    %c16 = arith.constant 16 : index
    %58 = vector.load %arg9[%c0_39, %c0_40, %c16] : memref<1x8x32xf32, #tpu.memory_space<vmem>>, vector<1x8x8xf32>
    %59 = vector.shape_cast %58 : vector<1x8x8xf32> to vector<8x8xf32>
    %60 = vector.shape_cast %57 : vector<8x8xf32> to vector<1x8x8xf32>
    tpu.vector_store %arg9[%c0_39, %c0_40, %c16], %60 {strides = array<i32>} : memref<1x8x32xf32, #tpu.memory_space<vmem>>, vector<1x8x8xf32>,
    %61 = vector.extract_strided_slice %45 {offsets = [3, 0, 0], sizes = [1, 8, 8], strides = [1, 1, 1]} : vector<4x8x8xf32> to vector<1x8x8xf32>
    %62 = vector.shape_cast %61 : vector<1x8x8xf32> to vector<8x8xf32>
    %c0_41 = arith.constant 0 : index
    %c0_42 = arith.constant 0 : index
    %c24 = arith.constant 24 : index
    %63 = vector.load %arg9[%c0_41, %c0_42, %c24] : memref<1x8x32xf32, #tpu.memory_space<vmem>>, vector<1x8x8xf32>
    %64 = vector.shape_cast %63 : vector<1x8x8xf32> to vector<8x8xf32>
    %65 = vector.shape_cast %62 : vector<8x8xf32> to vector<1x8x8xf32>
    tpu.vector_store %arg9[%c0_41, %c0_42, %c24], %65 {strides = array<i32>} : memref<1x8x32xf32, #tpu.memory_space<vmem>>, vector<1x8x8xf32>,
    return
  }
  func.func @transform_0(%arg0: i32, %arg1: i32) -> (i32, i32, i32) {
    %c0_i32 = arith.constant 0 : i32
    %c0_i32_0 = arith.constant 0 : i32
    %c0_i32_1 = arith.constant 0 : i32
    return %arg0, %c0_i32, %c0_i32_0 : i32, i32, i32
  }
  func.func @transform_1(%arg0: i32, %arg1: i32) -> (i32, i32) {
    %c0_i32 = arith.constant 0 : i32
    %c0_i32_0 = arith.constant 0 : i32
    %c0_i32_1 = arith.constant 0 : i32
    return %c0_i32, %c0_i32_0 : i32, i32
  }
  func.func @transform_2(%arg0: i32, %arg1: i32) -> (i32, i32) {
    %c0_i32 = arith.constant 0 : i32
    %c0_i32_0 = arith.constant 0 : i32
    %c0_i32_1 = arith.constant 0 : i32
    return %c0_i32, %c0_i32_0 : i32, i32
  }
  func.func @transform_3(%arg0: i32, %arg1: i32) -> (i32, i32) {
    %c0_i32 = arith.constant 0 : i32
    %c0_i32_0 = arith.constant 0 : i32
    %c0_i32_1 = arith.constant 0 : i32
    return %c0_i32, %c0_i32_0 : i32, i32
  }
  func.func @transform_4(%arg0: i32, %arg1: i32) -> (i32, i32) {
    %c0_i32 = arith.constant 0 : i32
    %c0_i32_0 = arith.constant 0 : i32
    %c0_i32_1 = arith.constant 0 : i32
    return %c0_i32, %c0_i32_0 : i32, i32
  }
  func.func @transform_5(%arg0: i32, %arg1: i32) -> (i32, i32) {
    %c0_i32 = arith.constant 0 : i32
    %c0_i32_0 = arith.constant 0 : i32
    %c0_i32_1 = arith.constant 0 : i32
    return %c0_i32, %c0_i32_0 : i32, i32
  }
  func.func @transform_6(%arg0: i32, %arg1: i32) -> (i32, i32) {
    %c0_i32 = arith.constant 0 : i32
    %c0_i32_0 = arith.constant 0 : i32
    %c0_i32_1 = arith.constant 0 : i32
    return %c0_i32, %c0_i32_0 : i32, i32
  }
  func.func @transform_7(%arg0: i32, %arg1: i32) -> (i32, i32, i32) {
    %c0_i32 = arith.constant 0 : i32
    %c0_i32_0 = arith.constant 0 : i32
    return %arg0, %arg1, %c0_i32 : i32, i32, i32
  }
  func.func @transform_8(%arg0: i32, %arg1: i32) -> (i32, i32, i32, i32) {
    %c0_i32 = arith.constant 0 : i32
    %c0_i32_0 = arith.constant 0 : i32
    %c0_i32_1 = arith.constant 0 : i32
    return %arg0, %c0_i32, %arg1, %c0_i32_0 : i32, i32, i32, i32
  }
}

</mosaic_0001>

<bundles_post_ra>
// kernel: tpu_custom_call.1
= control target key start
LH: loop header
LB: loop body
LE: loop exit
PB: predicated region body
PF: predicated region fallthrough
CT: control target
= control target key end

     0   :  { %s2464_s0 = inlined_call_operand.hbm [shape: f32[2,8,32], index: 0, kind: input, shape index: {}]   ;;  %s2465_s1 = inlined_call_operand.hbm [shape: f32[32,32], index: 1, kind: input, shape index: {}]   ;;  %s2466_s2 = inlined_call_operand.vmem [shape: f32[1,32], index: 2, kind: input, shape index: {}]   ;;  %s2467_s3 = inlined_call_operand.hbm [shape: f32[32,32], index: 3, kind: input, shape index: {}]   ;;  %s2468_s4 = inlined_call_operand.vmem [shape: f32[1,32], index: 4, kind: input, shape index: {}]   ;;  %s2469_s5 = inlined_call_operand.hbm [shape: f32[32,32], index: 5, kind: input, shape index: {}]   ;;  %s2470_s6 = inlined_call_operand.vmem [shape: f32[1,32], index: 6, kind: input, shape index: {}]   ;;  %s2471_s7 = inlined_call_operand.hbm [shape: f32[2,8,32], index: 7, kind: output, shape index: {0}]   ;;  %s2472_s8 = inlined_call_operand.hbm [shape: f32[2,4,8,8], index: 8, kind: output, shape index: {1}]  }
   0x1   :  { %2478 = sst [smem:[#allocation22_spill]] %s2465_s1 }
   0x2   :  { %2479 = sst [smem:[#allocation23_spill]] %s2467_s3 }
   0x3   :  { %2480 = sst [smem:[#allocation24_spill]] %s2469_s5 }
   0x4   :  { %14 = vsyncpa [#allocation6], 0 }
   0x5   :  { %16 = vsyncpa [#allocation6 + $0x1], 0 }
   0x6   :  { %17 = vsyncpa [#allocation9], 0 }
   0x7   :  { %18 = vsyncpa [#allocation12], 0 }
   0x8   :  { %19 = vsyncpa [#allocation7], 0 }
   0x9   :  { %21 = vsyncpa [#allocation7 + $0x1], 0 }
   0xa   :  { %22 = vsyncpa [#allocation15], 0 }
   0xb   :  { %24 = vsyncpa [#allocation15 + $0x1], 0  ;;  %s2116_s27 = smov 0   ;;  %s2118_s28 = smov 0  }
   0xc   :  { %s2120_s29 = smov 0   ;;  %s2122_s30 = smov 0  }
   0xd   :  { %s2124_s9 = smov 0   ;;  %s2126_s10 = smov 0  }
   0xe LB: > { %s1557_s11 = sadd.s32 4294967295, %s2052_s10   ;;  %s1558_s12 = sadd.s32 4294967294, %s2052_s10   ;;  %s2052_s10 = sphi %s2126_s10, %s30_s10   ;;  %s2048_s9 = sphi %s2124_s9, %s2503_s9   ;;  %s2044_s30 = sphi %s2122_s30, %s2502_s30   ;;  %s2040_s29 = sphi %s2120_s29, %s2501_s29   ;;  %s2036_s28 = sphi %s2118_s28, %s2500_s28   ;;  %s2032_s27 = sphi %s2116_s27, %s2499_s27  }
   0xf   : > { %p62_p0 = scmp.ne.s32.totalorder %s2036_s28, %s2032_s27  ;;  %p2150_p1 = scmp.eq.s32.totalorder %s1557_s11, 0 }
  0x10   : > { %p2154_p2 = scmp.eq.s32.totalorder %s1557_s11, 1  ;;  %p220_p3 = scmp.eq.s32.totalorder %s1558_s12, 1 }
  0x11   : > { %s2481_s13 = scalar_select %p2150_p1, 1, 0 }
  0x12   : > { %p2160_p4 = por %p2150_p1, %p62_p0  ;;  %p1559_p5 = scmp.ge.s32.totalorder %s2052_s10, 1 }
  0x13   : > { %p2165_p6 = por %p220_p3, %p62_p0  ;;  %p255_p7 = scmp.lt.s32.totalorder %s2052_s10, 3 }
  0x14   : > { %s2483_s15 = scalar_select %p2160_p4, 1, 0 }
  0x15   : > { %s2484_s16 = scalar_select %p2165_p6, 1, 0 }
  0x16   : > { %p2170_p8 = pnand %p1559_p5, %p255_p7  ;;  %s2054_s18 = smov [#allocation8]  }
  0x17   : > { %s267_s19 = sshll.u32 %s2054_s18, 4  ;;  %s2055_s21 = smov [#allocation10]   ;;  %s268_s19 = int_to_ptr.vmem [resolvable:$true] %s267_s19 }
  0x18   : > { %s2485_s17 = scalar_select %p2170_p8, 1, 0 }
  0x19   : > { %p1721_p9 = pneg %p2170_p8  ;;  %s283_s22 = sshll.u32 %s2055_s21, 4  ;;  %s284_s22 = int_to_ptr.vmem [resolvable:$true] %s283_s22 }
  0x1a   : > { %s2056_s23 = smov [#allocation11]   ;;  %s1839_s25 = scalar_lea.vmem %s268_s19, 512 }
  0x1b   : > { %p2179_p11 = pnand %p1721_p9, %p2150_p1  ;;  %s299_s24 = sshll.u32 %s2056_s23, 4  ;;  %s300_s24 = int_to_ptr.vmem [resolvable:$true] %s299_s24 }
  0x1c   : > { %p1840_p13 = scmp.ne.s32.totalorder %s268_s19, %s1839_s25  ;;  %p1847_p5 = scmp.lt.s32.totalorder %s268_s19, %s268_s19 }
  0x1d   : > { %p1830_p12 = pneg %p2179_p11  ;;  %p1848_p7 = scmp.lt.s32.totalorder %s1839_s25, %s1839_s25 }
  0x1f   : > { %p1842_p0 = pnand %p1840_p13, %p1830_p12  ;;  %p1849_p9 = por %p1848_p7, %p1847_p5 }
  0x21   : > { %p1843_p3 = pneg %p1842_p0 }
  0x23   : > { %p1850_p10 = pnand %p1849_p9, %p1843_p3 }
  0x25   : > { %1853 = shalt.err (!%p1850_p10)
}
  0x26   : > { %s2057_s26 = smov 128   ;;  %s2058_s11 = smov 8  }
  0x27   : > { %s2487_s1 = sld [smem:[#allocation22_spill]]  ;;  %s1865_s21 = scalar_lea.vmem %s284_s22, 512 }
  0x28   : > { %p1866_p6 = scmp.ne.s32.totalorder %s284_s22, %s1865_s21  ;;  %p1873_p1 = scmp.lt.s32.totalorder %s284_s22, %s284_s22 }
  0x29   : > { %p1874_p4 = scmp.lt.s32.totalorder %s1865_s21, %s1865_s21 }
  0x2a   : > { %p1868_p13 = pnand %p1866_p6, %p1830_p12 }
  0x2b   : > { %p1875_p5 = por %p1874_p4, %p1873_p1 }
  0x2c   : > { %p1869_p0 = pneg %p1868_p13 }
  0x2d   : > { %1724 = dma.hbm_to_vmem [thread:$0]  (!%p2179_p11), %s2487_s1, 512, %s268_s19, [#allocation9], %s2057_s26, %s2057_s26, %s2058_s11  }
  0x2e   : > { %p1876_p3 = pnand %p1875_p5, %p1869_p0 }
  0x30   : > { %1879 = shalt.err (!%p1876_p3)
}
  0x31   : > { %s2488_s3 = sld [smem:[#allocation23_spill]]  ;;  %s1891_s19 = scalar_lea.vmem %s300_s24, 512 }
  0x32   : > { %p1892_p10 = scmp.ne.s32.totalorder %s300_s24, %s1891_s19  ;;  %p1899_p9 = scmp.lt.s32.totalorder %s300_s24, %s300_s24 }
  0x33   : > { %p1900_p13 = scmp.lt.s32.totalorder %s1891_s19, %s1891_s19 }
  0x34   : > { %p1894_p7 = pnand %p1892_p10, %p1830_p12 }
  0x35   : > { %p1901_p8 = por %p1900_p13, %p1899_p9 }
  0x36   : > { %p1895_p6 = pneg %p1894_p7 }
  0x37   : > { %1727 = dma.hbm_to_vmem [thread:$0]  (!%p2179_p11), %s2488_s3, 512, %s284_s22, [#allocation9], %s2057_s26, %s2057_s26, %s2058_s11  }
  0x38   : > { %p1902_p1 = pnand %p1901_p8, %p1895_p6 }
  0x3a   : > { %1905 = shalt.err (!%p1902_p1)
}
  0x3b   : > { %s2489_s5 = sld [smem:[#allocation24_spill]]  ;;  %s49_s22 = sadd.s32 1, %s2040_s29 }
  0x3c   : > { %s42_s21 = sadd.s32 1, %s2048_s9  ;;  %p56_p4 = scmp.ne.s32.totalorder %s2040_s29, %s2036_s28 }
  0x3d   : > { %p44_p8 = scmp.ge.s32.totalorder %s42_s21, 2  ;;  %p57_p12 = scmp.eq.s32.totalorder %s2052_s10, 0 }
  0x3e   : > { %p2216_p0 = por %p2154_p2, %p56_p4  ;;  %p1745_p5 = scmp.lt.s32.totalorder %s2052_s10, 2 }
  0x3f   : > { %s2505_s21 = smov (%p44_p8, %s42_s21), 0  ;;  %p58_p3 = por %p57_p12, %p56_p4 }
  0x40   : > { %2491 = sst [smem:[#allocation21_spill]] %s2505_s21  ;;  %s316_s23 = sand.u32 1, %s2040_s29  }
  0x41   : > { %1730 = dma.hbm_to_vmem [thread:$0]  (!%p2179_p11), %s2489_s5, 512, %s300_s24, [#allocation12], %s2057_s26, %s2057_s26, %s2058_s11  }
  0x42   : > { %s46_s25 = ssub.s32 %s2048_s9, %s2505_s21  ;;  %s1564_s24 = sshll.u32 %s316_s23, 3 }
  0x43   : > { %p47_p10 = scmp.eq.s32.totalorder %s46_s25, 0  ;;  %s1565_s26 = sshll.u32 %s2048_s9, 7 }
  0x44   : > { %s325_s14 = scalar_lea.hbm %s2464_s0, %s1565_s26  ;;  %s320_s18 = scalar_lea.vmem [#allocation5], %s1564_s24 }
  0x45   : > { %s2228_s11 = scalar_select %p47_p10, %s2040_s29, %s49_s22  }
  0x46   : > { %s327_s1 = sshll.u32 %s320_s18, 4  ;;  %p2235_p2 = pnand %p1745_p5, %p58_p3  ;;  %s328_s1 = int_to_ptr.vmem [resolvable:$true] %s327_s1 }
  0x47   : > { %s317_s5 = scalar_lea.sflag [#allocation6], %s316_s23  ;;  %s1919_s25 = scalar_lea.vmem %s328_s1, 128 }
  0x48   : > { %p1908_p11 = pneg %p2235_p2  ;;  %p1920_p7 = scmp.ne.s32.totalorder %s328_s1, %s1919_s25 }
  0x49   : > { %s2059_s22 = smov [#allocation5]  }
  0x4a   : > { %p1922_p6 = pnand %p1920_p7, %p1908_p11  ;;  %s1924_s21 = sshll.u32 %s2059_s22, 4  ;;  %s1925_s21 = int_to_ptr.vmem [resolvable:$false] %s1924_s21 }
  0x4b   : > { %s1926_s26 = scalar_lea.vmem %s1925_s21, 256  ;;  %p1927_p13 = scmp.lt.s32.totalorder %s328_s1, %s1925_s21 }
  0x4c   : > { %p1923_p9 = pneg %p1922_p6  ;;  %p1928_p1 = scmp.lt.s32.totalorder %s1926_s26, %s1919_s25 }
  0x4e   : > { %p1929_p4 = por %p1928_p1, %p1927_p13 }
  0x50   : > { %p1930_p8 = pnand %p1929_p4, %p1923_p9 }
  0x52   : > { %1933 = shalt.err (!%p1930_p8)
}
  0x53   : > { %1734 = dma.hbm_to_vmem [thread:$0]  (!%p2235_p2), %s325_s14, 128, %s328_s1, %s317_s5  }
  0x54   : > { %p2493_p12 = scmp.ne.s32.totalorder %s2485_s17, 0 }
  0x55   : > { %s2246_s23 = sand.u32 (!%p2493_p12), 1, %s2036_s28   ;;  %p2494_p5 = scmp.ne.s32.totalorder (!%p2493_p12), %s2483_s15, 0 }
  0x56   : > { %336 = sbr.rel (%p2493_p12) target bundleno = 1265 (0x4f1), region = 48  ;;  %s1567_s24 = sshll.u32 (!%p2493_p12), %s2246_s23, 3 }
  0x57   : > { %s339_s19 = scalar_lea.sflag (!%p2493_p12), [#allocation6], %s2246_s23  ;;  %s342_s21 = scalar_lea.vmem (!%p2493_p12), [#allocation5], %s1567_s24 }
  0x5b   : > { %2011 = dma.done.wait (%p2494_p5), %s339_s19, 128  }
  0x5c   : > { %2013 = vsyncadd (%p2494_p5), %s339_s19, 4294967168  ;;  %p2495_p3 = scmp.ne.s32.totalorder %s2481_s13, 0 }
  0x5e   : > { %2015 = dma.done.wait (%p2495_p3), [#allocation9], 1024  }
  0x5f   : > { %2017 = vsyncadd (%p2495_p3), [#allocation9], 4294966272 }
  0x60   : > { %2019 = dma.done.wait (%p2495_p3), [#allocation12], 512  }
  0x61   : > { %2021 = vsyncadd (%p2495_p3), [#allocation12], 4294966784  ;;  %v2060_v0 = vmov 0.0   ;;  %vm2061_vm0 = vmmov 0   ;;  %v400_v1 = vld [vmem:[#allocation10 + $0x18] sm:$0xff]  ;;  %v399_v2 = vld [vmem:[#allocation10 + $0x10] sm:$0xff] }
  0x62   : > { %1630 = vmatprep.subr.mxu0 %v2060_v0  ;;  %1638 = vmatprep.mubr.msk.f32.mxu0 %vm2061_vm0, %v2060_v0  ;;  %v398_v3 = vld [vmem:[#allocation10 + $0x8] sm:$0xff]  ;;  %v397_v4 = vld [vmem:[#allocation10] sm:$0xff]  ;;  %v396_v5 = vld [vmem:[%s342_s21] sm:$0xff]  ;;  %vm408_vm1 = vcmask 261120   ;;  %vm563_vm2 = vcmask 64512   ;;  %s2062_s5 = smov 120  }
  0x63   : > { %1641 = vmatprep.subr.mxu1 %v2060_v0  ;;  %1649 = vmatprep.mubr.msk.f32.mxu1 %vm2061_vm0, %v2060_v0  ;;  %v602_v6 = vld [vmem:[#allocation8 + $0x18] sm:$0xff]  ;;  %v601_v7 = vld [vmem:[#allocation8 + $0x10] sm:$0xff]  ;;  %v600_v8 = vld [vmem:[#allocation8 + $0x8] sm:$0xff]  ;;  %s2063_s13 = smov 104   ;;  %s2064_s12 = smov 112  }
  0x64   : > { %1631 = vmatpush3.msra.mxu0 %v400_v1  ;;  %v599_v9 = vld [vmem:[#allocation8] sm:$0xff]  ;;  %v485_v10 = vld [vmem:[#allocation11 + $0x18] sm:$0xff]  ;;  %v484_v11 = vld [vmem:[#allocation11 + $0x10] sm:$0xff]  ;;  %s1572_s25 = sshll.u32 %s2246_s23, 5  ;;  %s2378_s26 = scalar_lea.vmem [#allocation13], %s1567_s24 }
  0x65   : > { %1632 = vmatprep.subr.mxu0 %v2060_v0  ;;  %1642 = vmatpush3.msra.mxu1 %v485_v10  ;;  %v483_v12 = vld [vmem:[#allocation11 + $0x8] sm:$0xff]  ;;  %v482_v13 = vld [vmem:[#allocation11] sm:$0xff]  ;;  %v1573_v14 = vld [vmem:[%s2468_s4] ss:$0 sm:$0xff]  ;;  %s2340_s22 = scalar_lea.vmem [#allocation14], %s1572_s25  ;;  %s1598_s21 = sshll.u32 %s2044_s30, 9 }
  0x66   : > { %1633 = vmatpush3.msra.mxu0 %v399_v2  ;;  %1643 = vmatprep.subr.mxu1 %v2060_v0  ;;  %v1577_v18 = vld [vmem:[%s2466_s2] ss:$0 sm:$0xff]  ;;  %s1412_s19 = sshll.u32 %s2340_s22, 4  ;;  %s2065_s24 = smov [#allocation14]   ;;  %s2383_s19 = int_to_ptr.vmem [resolvable:$true] %s1412_s19 }
  0x67   : > { %1634 = vmatprep.subr.mxu0 %v2060_v0  ;;  %1644 = vmatpush3.msra.mxu1 %v484_v11  ;;  %v1575_v25 = vld [vmem:[%s2470_s6] ss:$0 sm:$0xff]  ;;  %s1934_s15 = scalar_lea.vmem %s2383_s19, 512  ;;  %s1938_s17 = sshll.u32 %s2065_s24, 4  ;;  %s1939_s17 = int_to_ptr.vmem [resolvable:$false] %s1938_s17 }
  0x68   : > { %1635 = vmatpush3.msra.mxu0 %v398_v3  ;;  %1645 = vmatprep.subr.mxu1 %v2060_v0  ;;  %p1935_p10 = scmp.ne.s32.totalorder %s2383_s19, %s1934_s15  ;;  %p1941_p7 = scmp.lt.s32.totalorder %s2383_s19, %s1939_s17 }
  0x69   : > { %1636 = vmatprep.subr.mxu0 %v2060_v0  ;;  %1646 = vmatpush3.msra.mxu1 %v483_v12 }
  0x6a   : > { %1637 = vmatpush3.msra.mxu0 %v397_v4  ;;  %1647 = vmatprep.subr.mxu1 %v2060_v0  ;;  %p1936_p2 = pnand %p1935_p10, %p2216_p0 }
  0x6b   : > { %1639 = vmatmul.mubr.msk.f32.vlgmr.msra.gmra.mxu0 %vm408_vm1, %v396_v5  ;;  %1652 = vmatprep.subr.mxu0 %v2060_v0 }
  0x6c   : > { %1653 = vmatpush3.msra.mxu0 %v602_v6  ;;  %1660 = vmatprep.mubr.msk.f32.mxu0 %vm2061_vm0, %v2060_v0  ;;  %p1937_p11 = pneg %p1936_p2 }
  0x6d   : > { %1654 = vmatprep.subr.mxu0 %v2060_v0  ;;  %1648 = vmatpush3.msra.mxu1 %v482_v13 }
  0x6e   : > { %1655 = vmatpush3.msra.mxu0 %v601_v7  ;;  %1663 = vmatprep.subr.mxu1 %v2060_v0 }
  0x6f   : > { %1656 = vmatprep.subr.mxu0 %v2060_v0  ;;  %1650 = vmatmul.mubr.msk.f32.vlgmr.msra.gmra.mxu1 %vm408_vm1, %v396_v5 }
  0x70   : > { %1657 = vmatpush3.msra.mxu0 %v600_v8  ;;  %1665 = vmatprep.mubr.msk.f32.mxu1 %vm2061_vm0, %v2060_v0 }
  0x71   : > { %1658 = vmatprep.subr.mxu0 %v2060_v0 }
  0x72   : > { %1659 = vmatpush3.msra.mxu0 %v599_v9 }
  0x73   : > { %1661 = vmatmul.mubr.msk.f32.vlgmr.msra.gmra.mxu0 %vm408_vm1, %v396_v5  ;;  %1673 = vmatprep.subr.mxu0 %v2060_v0 }
  0x74   : > { %1675 = vmatprep.mubr.msk.f32.mxu0 %vm2061_vm0, %v2060_v0 }
 0x12b   : > { %v478_v15 = vpop.f32.mrf.mxu0 }
 0x12c   : > { %v479_v16 = vadd.f32 %v1573_v14, %v478_v15 }
 0x12d   : > { %v1640_v17 = vpop.f32.mrf.mxu0 }
 0x12e   : > { %564 = vst.msk [vmem:[#allocation3] sm:$0xff] %vm563_vm2, %v479_v16  ;;  %567 = vrot.lane.b32.xlu0 %v479_v16, %s2062_s5  ;;  %588 = vrot.lane.b32.xlu1 %v479_v16, %s2063_s13 }
 0x12f   : > { %v559_v26 = vpop.f32.mrf.mxu1 }
 0x130   : > { %v2313_v27 = vadd.f32 %v1575_v25, %v559_v26 }
 0x131   : > { %v1651_v28 = vpop.f32.mrf.mxu1 }
 0x132   : > { %578 = vrot.lane.b32.xlu0 %v479_v16, %s2064_s12  ;;  %565 = vst.msk [vmem:[#allocation4] sm:$0xff] %vm563_vm2, %v2313_v27 }
 0x133   : > { %v680_v19 = vpop.f32.mrf.mxu0 }
 0x134   : > { %v681_v20 = vadd.f32 %v1577_v18, %v680_v19 }
 0x135   : > { %v1662_v21 = vpop.f32.mrf.mxu0  ;;  %v707_v22 = vld [vmem:[#allocation3] sm:$0xff] }
 0x136   : > { %v684_v23 = vmul.f32 0.35355338, %v681_v20  ;;  %1664 = vmatpush3.xpose.msk.msra.mxu1 %vm563_vm2, %v707_v22 }
 0x137   : > { %1668 = vmatprep.subr.mxu1 %v2060_v0 }
 0x138   : > { %686 = vst.msk [vmem:[#allocation2] sm:$0xff] %vm563_vm2, %v684_v23  ;;  %693 = vrot.lane.b32.xlu0 %v684_v23, %s2064_s12  ;;  %688 = vrot.lane.b32.xlu1 %v684_v23, %s2062_s5 }
 0x139   : > { %v711_v41 = vld [vmem:[#allocation4] sm:$0xff] }
 0x13c   : > { %698 = vrot.lane.b32.xlu1 %v684_v23, %s2063_s13 }
 0x13f   : > { %v703_v24 = vld [vmem:[#allocation2] sm:$0xff] }
 0x140   : > { %1666 = vmatmul.mubr.msk.f32.vlgmr.msra.gmra.mxu1 %vm563_vm2, %v703_v24 }
 0x141   : > { %1670 = vmatprep.mubr.msk.f32.mxu1 %vm2061_vm0, %v2060_v0 }
 0x1a0   : > { %v568_v29 = vpop.permute.xlu0 %567  ;;  %v589_v30 = vpop.permute.xlu1 %588 }
 0x1a1   : > { %571 = vst.msk [vmem:[#allocation3 + $0x8] sm:$0xff] %vm563_vm2, %v568_v29  ;;  %592 = vst.msk [vmem:[#allocation3 + $0x18] sm:$0xff] %vm563_vm2, %v589_v30 }
 0x1a4   : > { %v579_v31 = vpop.permute.xlu0 %578 }
 0x1a5   : > { %582 = vst.msk [vmem:[#allocation3 + $0x10] sm:$0xff] %vm563_vm2, %v579_v31 }
 0x1a8   : > { %v708_v32 = vld [vmem:[#allocation3 + $0x8] sm:$0xff]  ;;  %v710_v39 = vld [vmem:[#allocation3 + $0x18] sm:$0xff] }
 0x1a9   : > { %1669 = vmatpush3.xpose.msk.msra.mxu1 %vm563_vm2, %v708_v32 }
 0x1aa   : > { %v694_v33 = vpop.permute.xlu0 %693  ;;  %v689_v34 = vpop.permute.xlu1 %688  ;;  %1678 = vmatprep.subr.mxu1 %v2060_v0 }
 0x1ab   : > { %697 = vst.msk [vmem:[#allocation2 + $0x10] sm:$0xff] %vm563_vm2, %v694_v33  ;;  %692 = vst.msk [vmem:[#allocation2 + $0x8] sm:$0xff] %vm563_vm2, %v689_v34 }
 0x1ac   : > { %v709_v35 = vld [vmem:[#allocation3 + $0x10] sm:$0xff] }
 0x1ad   : > { %1674 = vmatpush3.xpose.msk.msra.mxu0 %vm563_vm2, %v709_v35 }
 0x1ae   : > { %v699_v36 = vpop.permute.xlu1 %698  ;;  %1683 = vmatprep.subr.mxu0 %v2060_v0 }
 0x1af   : > { %702 = vst.msk [vmem:[#allocation2 + $0x18] sm:$0xff] %vm563_vm2, %v699_v36 }
 0x1b2   : > { %v704_v37 = vld [vmem:[#allocation2 + $0x8] sm:$0xff]  ;;  %v705_v38 = vld [vmem:[#allocation2 + $0x10] sm:$0xff] }
 0x1b3   : > { %1671 = vmatmul.mubr.msk.f32.vlgmr.msra.gmra.mxu1 %vm563_vm2, %v704_v37  ;;  %1676 = vmatmul.mubr.msk.f32.vlgmr.msra.gmra.mxu0 %vm563_vm2, %v705_v38 }
 0x1b4   : > { %1679 = vmatpush3.xpose.msk.msra.mxu1 %vm563_vm2, %v710_v39  ;;  %1680 = vmatprep.mubr.msk.f32.mxu1 %vm2061_vm0, %v2060_v0 }
 0x1b5   : > { %1688 = vmatprep.subr.mxu1 %v2060_v0  ;;  %1685 = vmatprep.mubr.msk.f32.mxu0 %vm2061_vm0, %v2060_v0 }
 0x1b6   : > { %v706_v40 = vld [vmem:[#allocation2 + $0x18] sm:$0xff]  ;;  %1684 = vmatpush3.msra.mxu0 %v711_v41 }
 0x1b7   : > { %1681 = vmatmul.mubr.msk.f32.vlgmr.msra.gmra.mxu1 %vm563_vm2, %v706_v40  ;;  %1693 = vmatprep.subr.mxu0 %v2060_v0 }
 0x1b8   : > { %1690 = vmatprep.mubr.msk.f32.mxu1 %vm2061_vm0, %v2060_v0 }
 0x200   : > { %v787_v42 = vpop.f32.mrf.mxu1 }
 0x201   : > { %1019 = vst.msk [vmem:[%s2340_s22] sm:$0xff] %vm563_vm2, %v787_v42  ;;  %v1023_v43 = vsel %vm563_vm2, %v787_v42, -inf }
 0x202   : > { %1024 = vmax.xlane.f32.xlu0 %v1023_v43  ;;  %v1667_v44 = vpop.f32.mrf.mxu1 }
 0x273   : > { %v863_v45 = vpop.f32.mrf.mxu1  ;;  %v939_v46 = vpop.f32.mrf.mxu0 }
 0x274   : > { %1020 = vst.msk [vmem:[%s2340_s22 + $0x8] sm:$0xff] %vm563_vm2, %v863_v45  ;;  %1021 = vst.msk [vmem:[%s2340_s22 + $0x10] sm:$0xff] %vm563_vm2, %v939_v46  ;;  %v1026_v47 = vsel %vm563_vm2, %v863_v45, -inf  ;;  %v1029_v48 = vsel %vm563_vm2, %v939_v46, -inf }
 0x275   : > { %1027 = vmax.xlane.f32.xlu1 %v1026_v47  ;;  %v1672_v49 = vpop.f32.mrf.mxu1  ;;  %1030 = vmax.xlane.f32.xlu0 %v1029_v48  ;;  %v1677_v50 = vpop.f32.mrf.mxu0 }
 0x277   : > { %v1015_v51 = vpop.f32.mrf.mxu1 }
 0x278   : > { %1022 = vst.msk [vmem:[%s2340_s22 + $0x18] sm:$0xff] %vm563_vm2, %v1015_v51  ;;  %v1032_v52 = vsel %vm563_vm2, %v1015_v51, -inf }
 0x279   : > { %v1682_v53 = vpop.f32.mrf.mxu1  ;;  %1033 = vmax.xlane.f32.xlu0 %v1032_v52 }
 0x286   : > { %573 = vrot.lane.b32.xlu1 %v2313_v27, %s2062_s5  ;;  %s2389_s5 = scalar_lea.hbm %s2472_s8, %s1598_s21 }
 0x28b   : > { %v1025_v54 = vpop.xlane.xlu0 %1024 }
 0x28c   : > { %v1035_v55 = vsub.f32 %v787_v42, %v1025_v54 }
 0x28e   : > { %v1039_v56 = vmul.f32 1.442695, %v1035_v55 }
 0x290   : > { %1812 = vpow2.f32 %v1039_v56 }
 0x29d   : > { %v1813_v57 = vpop.eup %1812 }
 0x29e   : > { %v1047_v58 = vsel %vm563_vm2, %v1813_v57, 0.0 }
 0x2aa   : > { %1048 = vadd.xlane.f32.xlu1 %v1047_v58 }
 0x2fe   : > { %v1028_v59 = vpop.xlane.xlu1 %1027  ;;  %v1031_v60 = vpop.xlane.xlu0 %1030 }
 0x2ff   : > { %v1036_v61 = vsub.f32 %v863_v45, %v1028_v59  ;;  %v1037_v62 = vsub.f32 %v939_v46, %v1031_v60 }
 0x301   : > { %v1041_v63 = vmul.f32 1.442695, %v1036_v61  ;;  %v1043_v1 = vmul.f32 1.442695, %v1037_v62 }
 0x302   : > { %v574_v2 = vpop.permute.xlu1 %573  ;;  %v1034_v3 = vpop.xlane.xlu0 %1033 }
 0x303   : > { %1814 = vpow2.f32 %v1041_v63  ;;  %577 = vst.msk [vmem:[#allocation4 + $0x8] sm:$0xff] %vm563_vm2, %v574_v2  ;;  %v1038_v4 = vsub.f32 %v1015_v51, %v1034_v3 }
 0x304   : > { %1816 = vpow2.f32 %v1043_v1 }
 0x305   : > { %v1045_v5 = vmul.f32 1.442695, %v1038_v4 }
 0x307   : > { %1818 = vpow2.f32 %v1045_v5 }
 0x30a   : > { %v712_v6 = vld [vmem:[#allocation4 + $0x8] sm:$0xff] }
 0x30b   : > { %1689 = vmatpush3.msra.mxu1 %v712_v6 }
 0x30c   : > { %1698 = vmatprep.subr.mxu1 %v2060_v0 }
 0x310   : > { %v1815_v7 = vpop.eup %1814 }
 0x311   : > { %v1817_v8 = vpop.eup %1816  ;;  %v1050_v9 = vsel %vm563_vm2, %v1815_v7, 0.0 }
 0x312   : > { %1051 = vadd.xlane.f32.xlu0 %v1050_v9  ;;  %v1053_v10 = vsel %vm563_vm2, %v1817_v8, 0.0 }
 0x313   : > { %1054 = vadd.xlane.f32.xlu1 %v1053_v10 }
 0x314   : > { %v1819_v11 = vpop.eup %1818 }
 0x315   : > { %v1056_v12 = vsel %vm563_vm2, %v1819_v11, 0.0 }
 0x316   : > { %1057 = vadd.xlane.f32.xlu0 %v1056_v12 }
 0x324   : > { %593 = vrot.lane.b32.xlu1 %v2313_v27, %s2063_s13  ;;  %s1384_s13 = scalar_lea.sflag [#allocation15], %s2246_s23 }
 0x32c   : > { %583 = vrot.lane.b32.xlu0 %v2313_v27, %s2064_s12  ;;  %s1940_s12 = scalar_lea.vmem %s1939_s17, 1024 }
 0x32d   : > { %p1942_p6 = scmp.lt.s32.totalorder %s1940_s12, %s1934_s15 }
 0x32f   : > { %p1943_p9 = por %p1942_p6, %p1941_p7 }
 0x331   : > { %p1944_p13 = pnand %p1943_p9, %p1937_p11 }
 0x333   : > { %v1049_v13 = vpop.xlane.xlu1 %1048 }
 0x334   : > { %1820 = vrcp.f32 %v1049_v13 }
 0x341   : > { %v1821_v14 = vpop.eup %1820 }
 0x342   : > { %v1063_v15 = vmul.f32 %v1821_v14, %v1813_v57 }
 0x344   : > { %1686 = vmatmul.mubr.msk.f32.vlgmr.msra.gmra.mxu0 %vm563_vm2, %v1063_v15 }
 0x345   : > { %1695 = vmatprep.mubr.msk.f32.mxu0 %vm2061_vm0, %v2060_v0 }
 0x39b   : > { %v1052_v16 = vpop.xlane.xlu0 %1051 }
 0x39c   : > { %v1055_v17 = vpop.xlane.xlu1 %1054  ;;  %1822 = vrcp.f32 %v1052_v16 }
 0x39d   : > { %1824 = vrcp.f32 %v1055_v17 }
 0x39f   : > { %v1058_v18 = vpop.xlane.xlu0 %1057 }
 0x3a0   : > { %v594_v19 = vpop.permute.xlu1 %593  ;;  %1826 = vrcp.f32 %v1058_v18 }
 0x3a1   : > { %597 = vst.msk [vmem:[#allocation4 + $0x18] sm:$0xff] %vm563_vm2, %v594_v19 }
 0x3a3   : > { %v584_v20 = vpop.permute.xlu0 %583 }
 0x3a4   : > { %587 = vst.msk [vmem:[#allocation4 + $0x10] sm:$0xff] %vm563_vm2, %v584_v20 }
 0x3a8   : > { %v714_v26 = vld [vmem:[#allocation4 + $0x18] sm:$0xff] }
 0x3a9   : > { %v1823_v21 = vpop.eup %1822 }
 0x3aa   : > { %v1825_v22 = vpop.eup %1824  ;;  %v1064_v23 = vmul.f32 %v1823_v21, %v1815_v7 }
 0x3ab   : > { %v713_v24 = vld [vmem:[#allocation4 + $0x10] sm:$0xff]  ;;  %v1065_v25 = vmul.f32 %v1825_v22, %v1817_v8 }
 0x3ac   : > { %1691 = vmatmul.mubr.msk.f32.vlgmr.msra.gmra.mxu1 %vm563_vm2, %v1064_v23  ;;  %1694 = vmatpush3.msra.mxu0 %v713_v24 }
 0x3ad   : > { %v1827_v27 = vpop.eup %1826  ;;  %1699 = vmatpush3.msra.mxu1 %v714_v26  ;;  %1696 = vmatmul.mubr.msk.f32.vlgmr.msra.gmra.mxu0 %vm563_vm2, %v1065_v25 }
 0x3ae   : > { %1700 = vmatprep.mubr.msk.f32.mxu1 %vm2061_vm0, %v2060_v0  ;;  %v1066_v28 = vmul.f32 %v1827_v27, %v1819_v11 }
 0x3b0   : > { %1701 = vmatmul.mubr.msk.f32.vlgmr.msra.gmra.mxu1 %vm563_vm2, %v1066_v28 }
 0x404   : > { %v1136_v29 = vpop.f32.mrf.mxu0 }
 0x405   : > { %1359 = vst.msk [vmem:[%s2378_s26] sm:$0xff] %vm563_vm2, %v1136_v29 }
 0x406   : > { %v1687_v30 = vpop.f32.mrf.mxu0 }
 0x407   : > { %1947 = shalt.err (!%p1944_p13)
}
 0x408   : > { %s1948_s14 = scalar_lea.hbm %s2389_s5, 512  ;;  %s1952_s22 = scalar_lea.hbm %s2472_s8, 1024 }
 0x409   : > { %p1949_p1 = scmp.ne.s32.totalorder %s2389_s5, %s1948_s14  ;;  %p1953_p12 = scmp.lt.s32.totalorder %s2389_s5, %s2472_s8 }
 0x40a   : > { %p1954_p5 = scmp.lt.s32.totalorder %s1952_s22, %s1948_s14 }
 0x40b   : > { %p1950_p4 = pnand %p1949_p1, %p2216_p0 }
 0x40c   : > { %p1955_p3 = por %p1954_p5, %p1953_p12 }
 0x40d   : > { %p1951_p8 = pneg %p1950_p4 }
 0x40f   : > { %p1956_p10 = pnand %p1955_p3, %p1951_p8 }
 0x411   : > { %1959 = shalt.err (!%p1956_p10)
}
 0x412   : > { %s2066_s3 = smov 128   ;;  %s2067_s15 = smov 8   ;;  %vm1364_vm3 = vcmask 130112   ;;  %vm1370_vm4 = vcmask 195712   ;;  %vm1376_vm5 = vcmask 261312  }
 0x413   : > { %1718 = dma.vmem_to_hbm [thread:$0]  (%p2216_p0), %s2383_s19, 512, %s2389_s5, %s1384_s13, %s2066_s3, %s2066_s3, %s2067_s15  }
 0x414   : > { %s2068_s24 = smov 16   ;;  %s2069_s17 = smov 24  }
 0x415   : > { %s1593_s19 = sshll.u32 %s2044_s30, 7  ;;  %s1398_s5 = sshll.u32 %s2378_s26, 4  ;;  %s1399_s5 = int_to_ptr.vmem [resolvable:$true] %s1398_s5 }
 0x416   : > { %s2421_s14 = scalar_lea.hbm %s2471_s7, %s1593_s19  ;;  %s1379_s18 = scalar_lea.sflag [#allocation7], %s2246_s23 }
 0x417   : > { %s1960_s25 = scalar_lea.vmem %s1399_s5, 128  ;;  %s2070_s30 = smov [#allocation13]  }
 0x418   : > { %p1961_p2 = scmp.ne.s32.totalorder %s1399_s5, %s1960_s25  ;;  %s1964_s22 = sshll.u32 %s2070_s30, 4  ;;  %s1965_s22 = int_to_ptr.vmem [resolvable:$false] %s1964_s22 }
 0x419   : > { %s1966_s21 = scalar_lea.vmem %s1965_s22, 256  ;;  %p1967_p6 = scmp.lt.s32.totalorder %s1399_s5, %s1965_s22 }
 0x41a   : > { %p1962_p11 = pnand %p1961_p2, %p2216_p0  ;;  %p1968_p9 = scmp.lt.s32.totalorder %s1966_s21, %s1960_s25 }
 0x41c   : > { %p1963_p7 = pneg %p1962_p11  ;;  %p1969_p13 = por %p1968_p9, %p1967_p6 }
 0x41e   : > { %p1970_p1 = pnand %p1969_p13, %p1963_p7 }
 0x46c   : > { %v1209_v0 = vpop.f32.mrf.mxu1 }
 0x46d   : > { %1361 = vrot.lane.b32.xlu1 %v1209_v0, %s2067_s15  ;;  %v1282_v31 = vpop.f32.mrf.mxu0 }
 0x46e   : > { %v1692_v32 = vpop.f32.mrf.mxu1  ;;  %1367 = vrot.lane.b32.xlu0 %v1282_v31, %s2068_s24 }
 0x46f   : > { %v1697_v33 = vpop.f32.mrf.mxu0 }
 0x470   : > { %v1355_v34 = vpop.f32.mrf.mxu1 }
 0x471   : > { %1373 = vrot.lane.b32.xlu1 %v1355_v34, %s2069_s17 }
 0x472   : > { %v1702_v35 = vpop.f32.mrf.mxu1 }
 0x4df   : > { %v1362_v36 = vpop.permute.xlu1 %1361 }
 0x4e0   : > { %1365 = vst.msk [vmem:[%s2378_s26] sm:$0xff] %vm1364_vm3, %v1362_v36  ;;  %v1368_v37 = vpop.permute.xlu0 %1367 }
 0x4e1   : > { %1371 = vst.msk [vmem:[%s2378_s26] sm:$0xff] %vm1370_vm4, %v1368_v37 }
 0x4e3   : > { %v1374_v38 = vpop.permute.xlu1 %1373 }
 0x4e4   : > { %1377 = vst.msk [vmem:[%s2378_s26] sm:$0xff] %vm1376_vm5, %v1374_v38 }
 0x4e5   : > { %1973 = shalt.err (!%p1970_p1)
}
 0x4e6   : > { %s1974_s26 = scalar_lea.hbm %s2421_s14, 128  ;;  %s1978_s3 = scalar_lea.hbm %s2471_s7, 256 }
 0x4e7   : > { %p1975_p4 = scmp.ne.s32.totalorder %s2421_s14, %s1974_s26  ;;  %p1979_p5 = scmp.lt.s32.totalorder %s2421_s14, %s2471_s7 }
 0x4e8   : > { %p1980_p3 = scmp.lt.s32.totalorder %s1978_s3, %s1974_s26 }
 0x4e9   : > { %p1976_p8 = pnand %p1975_p4, %p2216_p0 }
 0x4ea   : > { %p1981_p10 = por %p1980_p3, %p1979_p5 }
 0x4eb   : > { %p1977_p12 = pneg %p1976_p8 }
 0x4ed   : > { %p1982_p2 = pnand %p1981_p10, %p1977_p12 }
 0x4ef   : > { %1985 = shalt.err (!%p1982_p2)
}
 0x4f0   : > { %1717 = dma.vmem_to_hbm [thread:$0]  (%p2216_p0), %s1399_s5, 128, %s2421_s14, %s1379_s18  }
 0x4f1 PF: > { %s1427_s17 = sand.u32 1, %s2032_s27   ;;  %p2496_p11 = scmp.ne.s32.totalorder %s2484_s16, 0 }
 0x4f2   : > { %p2497_p7 = scmp.ge.s32.totalorder %s2052_s10, 2  ;;  %s1428_s19 = scalar_lea.sflag [#allocation7], %s1427_s17 }
 0x4f4   : > { %p1736_p6 = pnand %p2497_p7, %p2496_p11 }
 0x4f6   : > { %p1737_p9 = pneg %p1736_p6 }
 0x4f8   : > { %2023 = dma.done.wait (%p1737_p9), %s1428_s19, 128  }
 0x4f9   : > { %2025 = vsyncadd (%p1737_p9), %s1428_s19, 4294967168  ;;  %s1437_s13 = scalar_lea.sflag [#allocation15], %s1427_s17 }
 0x4fa   : > { %2027 = dma.done.wait (%p1737_p9), %s1437_s13, 512  }
 0x4fb   : > { %2029 = vsyncadd (%p1737_p9), %s1437_s13, 4294966784  ;;  %s30_s10 = sadd.s32 1, %s2052_s10   ;;  %s2498_s20 = sld [smem:[#allocation21_spill]] }
 0x4fc   : > { %p27_p13 = scmp.ge.s32.totalorder %s30_s10, 4   ;;  %s2499_s27 = smov %s2036_s28 }
 0x4fd   : > { %s2500_s28 = smov %s2040_s29  ;;  %s2501_s29 = smov %s2228_s11 }
 0x4fe   : > { %s2502_s30 = smov %s2048_s9  ;;  %29 = sbr.rel (!%p27_p13) target bundleno = 14 (0xe), region = 135 }
 0x501   : > { %s2503_s9 = smov %s2498_s20 }
 0x503   :  { %1442 = vsyncpa [#allocation6], 1 }
 0x504   :  { %1444 = vsyncpa [#allocation6 + $0x1], 1 }
 0x505   :  { %1445 = vsyncpa [#allocation9], 1 }
 0x506   :  { %1446 = vsyncpa [#allocation12], 1 }
 0x507   :  { %1447 = vsyncpa [#allocation7], 1 }
 0x508   :  { %1449 = vsyncpa [#allocation7 + $0x1], 1 }
 0x509   :  { %1450 = vsyncpa [#allocation15], 1 }
 0x50a   :  { %1452 = vsyncpa [#allocation15 + $0x1], 1 }

</bundles_post_ra>
